<compile_context>
chip_gen: v7x
topology: tpu7x:2x2x1
jax: 0.10.0
libtpu: 0.0.40
codegen_flags: <defaults>
</compile_context>

<pallas_src>
import functools

import jax
import jax.numpy as jnp
from jax import lax
from jax.experimental import pallas as pl
from jax.experimental.pallas import tpu as pltpu


def _round_up(x, m):
    return (x + m - 1) // m * m


def _bottleneck2conv_kernel(x_ref, w1_ref, w2_ref, b1_ref, b2_ref, mask_ref,
                            out_ref, col1_ref, col2_ref, *,
                            width, hw, cin_p, cout_p, b_tile, compute_dtype):
    """One grid step: b_tile images, both convs fused.

    x_ref   : [b_tile, cin_p, hw]       compute_dtype, channels on sublanes
    w1_ref  : [cout_p, 9*cin_p]         compute_dtype, BN1 scale pre-folded
    w2_ref  : [cout_p, 9*cout_p]        compute_dtype, BN2 scale pre-folded
    b1_ref  : [cout_p, 1] f32           BN1 shift
    b2_ref  : [cout_p, 1] f32           BN2 shift
    mask_ref: [9, 1, hw] compute_dtype  tap validity mask (zero = conv zero-pad)
    out_ref : [b_tile, cout_p, hw] f32
    col1_ref: [9*cin_p,  b_tile*hw]     compute_dtype im2col scratch (conv1)
    col2_ref: [9*cout_p, b_tile*hw]     compute_dtype im2col scratch (conv2)
    """

    def stage(inp, col_ref, c, b):
        # Write the 9 shifted+masked tap patches of image b into the im2col
        # scratch at sublane offset k*c / lane offset b*hw (both static and
        # tile-aligned).  roll along the flattened spatial (lane) axis plus the
        # boundary mask IS the conv zero-padding; the mask apply is folded into
        # the staging store.
        for dy in range(3):
            for dx in range(3):
                k = dy * 3 + dx
                off = (dy - 1) * width + (dx - 1)   # static flat spatial offset
                if off == 0:
                    patch = inp                      # center tap: no shift/mask
                else:
                    patch = pltpu.roll(inp, shift=(-off) % hw, axis=1) * mask_ref[k]
                col_ref[pl.ds(k * c, c), pl.ds(b * hw, hw)] = patch

    # ---- conv1: im2col stage, then ONE K = 9*cin_p GEMM on the MXU ----
    for b in range(b_tile):
        stage(x_ref[b], col1_ref, cin_p, b)
    h1 = jnp.dot(w1_ref[...], col1_ref[...], preferred_element_type=jnp.float32)
    h1 = jnp.maximum(h1 + b1_ref[...], 0.0)           # BN1 shift + ReLU (fp32)
    h1 = h1.astype(compute_dtype)                     # single cast before conv2
    # TODO(synk): for large Cout*HW (e.g. 64x3136+) tile the lane axis with a
    # 1-row halo recompute so h1 / the accumulators never spill out of vregs.

    # ---- conv2: same scheme, K = 9*cout_p ----
    for b in range(b_tile):
        stage(h1[:, b * hw:(b + 1) * hw], col2_ref, cout_p, b)
    out = jnp.dot(w2_ref[...], col2_ref[...], preferred_element_type=jnp.float32)
    out = jnp.maximum(out + b2_ref[...], 0.0)         # BN2 shift + ReLU

    # TODO(synk): optional `downsample` residual branch (arbitrary nn.Module,
    # default None) is not implemented; per the spec there is no identity add
    # when downsample is None, so this matches the default configuration.
    for b in range(b_tile):
        out_ref[b] = out[:, b * hw:(b + 1) * hw].astype(out_ref.dtype)


def _fold_weight(w_oihw, scale, cin_p, cout_p, compute_dtype):
    """OIHW conv weight * per-out-channel BN scale -> [cout_p, 9*cin_p] GEMM matrix.

    Row index layout matches the im2col scratch: column k*cin_p + i holds
    w[o, i, dy, dx] with k = dy*3 + dx.  Padded rows/cols are zero.
    """
    cout, cin = w_oihw.shape[0], w_oihw.shape[1]
    w = w_oihw * scale[:, None, None, None]
    w_pad = jnp.zeros((cout_p, cin_p, 3, 3), w.dtype).at[:cout, :cin].set(w)
    return jnp.transpose(w_pad, (0, 2, 3, 1)).reshape(cout_p, 9 * cin_p).astype(compute_dtype)


def _pad_shift(shift, cout_p):
    cout = shift.shape[0]
    return jnp.zeros((cout_p, 1), jnp.float32).at[:cout, 0].set(shift.astype(jnp.float32))


def _pick_b_tile(n, cin_p, cout_p, hw_p, cbytes, budget=20 * 1024 * 1024):
    """Largest batch tile that keeps >=2 parallel grid steps (v7x megacore) and
    keeps double-buffered blocks + im2col scratch within a conservative VMEM
    budget (v7x has only 64 MiB physical VMEM)."""
    def need(bt):
        return (2 * bt * cin_p * hw_p * cbytes               # x, double-buffered
                + 2 * bt * cout_p * hw_p * 4                 # out, double-buffered
                + 9 * (cin_p + cout_p) * bt * hw_p * cbytes)  # im2col scratch
    best = 1
    for bt in range(1, n + 1):
        if n % bt:
            continue
        if n >= 2 and n // bt < 2:
            continue                 # keep both v7x TensorCores busy
        if need(bt) > budget:
            continue
        best = bt
    return best
    # TODO(synk): for n == 1 add a second "parallel" spatial-tile grid axis
    # (1-row halo recompute) so a single image still uses both v7x TCs.


def bottleneck2conv(x_nchw, w1_oihw, w2_oihw, scale1, shift1, scale2, shift2, *,
                    compute_dtype=jnp.bfloat16):
    """Forward of Bottleneck2Conv (stride=1, bias=False, downsample=None).

    BN (eval mode) is pre-folded: scale = gamma/sqrt(var+eps), shift = beta - mean*scale.
    compute_dtype: MXU / elementwise operand dtype (bf16 default for v6e/v7x;
    pass jnp.float32 on v5e or for tighter numerics).  Accumulation is fp32.
    """
    n, cin, h, w = x_nchw.shape
    cout = w1_oihw.shape[0]
    hw = h * w
    cbytes = jnp.dtype(compute_dtype).itemsize
    sub = 8 * (4 // cbytes)                    # native sublane tile: 8 (f32) / 16 (bf16)
    cin_p, cout_p = _round_up(cin, sub), _round_up(cout, sub)
    hw_p = _round_up(hw, 128)                  # lane padding replaces the old hard assert

    # NCHW -> [N, cin_p, hw_p]: free reshape + zero pad; cast once to compute dtype
    # (halves x's HBM->VMEM DMA bytes for bf16).
    x_flat = x_nchw.reshape(n, cin, hw).astype(compute_dtype)
    x_flat = jnp.pad(x_flat, ((0, 0), (0, cin_p - cin), (0, hw_p - hw)))

    # Fold BN scale into the conv weights; GEMM-form [cout_p, 9*c_p] matrices.
    w1_mat = _fold_weight(w1_oihw, scale1, cin_p, cout_p, compute_dtype)
    w2_mat = _fold_weight(w2_oihw, scale2, cout_p, cout_p, compute_dtype)
    b1 = _pad_shift(shift1, cout_p)
    b2 = _pad_shift(shift2, cout_p)

    # Tap validity masks over the padded flattened spatial axis.  Valid positions
    # never read wrapped/pad lanes, so roll + mask reproduces conv zero-padding.
    p = jnp.arange(hw_p, dtype=jnp.int32)
    yy, xx, in_img = p // w, p % w, p < hw
    masks = []
    for dy in range(3):
        for dx in range(3):
            vy = (yy + dy - 1 >= 0) & (yy + dy - 1 < h)
            vx = (xx + dx - 1 >= 0) & (xx + dx - 1 < w)
            masks.append((vy & vx & in_img).astype(compute_dtype))
    mask_arr = jnp.stack(masks).reshape(9, 1, hw_p)

    b_tile = _pick_b_tile(n, cin_p, cout_p, hw_p, cbytes)
    grid = (n // b_tile,)

    kernel = functools.partial(_bottleneck2conv_kernel, width=w, hw=hw_p,
                               cin_p=cin_p, cout_p=cout_p, b_tile=b_tile,
                               compute_dtype=compute_dtype)

    flops = 2 * n * hw * 9 * (cin * cout + cout * cout)
    bytes_accessed = (x_flat.size * cbytes + n * cout_p * hw_p * 4
                      + (w1_mat.size + w2_mat.size + mask_arr.size) * cbytes
                      + (b1.size + b2.size) * 4)
    cost = pl.CostEstimate(flops=flops, transcendentals=0,
                           bytes_accessed=bytes_accessed)

    out_flat = pl.pallas_call(
        kernel,
        out_shape=jax.ShapeDtypeStruct((n, cout_p, hw_p), jnp.float32),
        grid_spec=pltpu.PrefetchScalarGridSpec(
            num_scalar_prefetch=0,
            grid=grid,
            in_specs=[
                pl.BlockSpec((b_tile, cin_p, hw_p), lambda i: (i, 0, 0)),   # x
                pl.BlockSpec((cout_p, 9 * cin_p), lambda i: (0, 0)),        # w1 (resident)
                pl.BlockSpec((cout_p, 9 * cout_p), lambda i: (0, 0)),       # w2 (resident)
                pl.BlockSpec((cout_p, 1), lambda i: (0, 0)),                # bn1 shift
                pl.BlockSpec((cout_p, 1), lambda i: (0, 0)),                # bn2 shift
                pl.BlockSpec((9, 1, hw_p), lambda i: (0, 0, 0)),            # tap masks
            ],
            out_specs=pl.BlockSpec((b_tile, cout_p, hw_p), lambda i: (i, 0, 0)),
            scratch_shapes=[
                pltpu.VMEM((9 * cin_p, b_tile * hw_p), compute_dtype),      # im2col conv1
                pltpu.VMEM((9 * cout_p, b_tile * hw_p), compute_dtype),     # im2col conv2
            ],
        ),
        compiler_params=pltpu.CompilerParams(
            dimension_semantics=("parallel",),   # shard batch over v7x's 2 TCs
            vmem_limit_bytes=48 * 1024 * 1024,   # under v7x's 64 MiB physical VMEM
        ),
        cost_estimate=cost,
    )(x_flat, w1_mat, w2_mat, b1, b2, mask_arr)

    # Drop channel / lane padding (no-ops at typical ResNet sizes), restore NCHW.
    return out_flat[:, :cout, :hw].reshape(n, cout, h, w)


def _ref_forward(x, w1_oihw, w2_oihw, scale1, shift1, scale2, shift2):
    """Pure-JAX reference (NCHW), mirrors the PyTorch forward with eval-mode BN."""
    dn = ('NCHW', 'OIHW', 'NCHW')
    y = lax.conv_general_dilated(x, w1_oihw, (1, 1), ((1, 1), (1, 1)),
                                 dimension_numbers=dn,
                                 precision=lax.Precision.HIGHEST)
    y = jnp.maximum(y * scale1[None, :, None, None] + shift1[None, :, None, None], 0.0)
    y = lax.conv_general_dilated(y, w2_oihw, (1, 1), ((1, 1), (1, 1)),
                                 dimension_numbers=dn,
                                 precision=lax.Precision.HIGHEST)
    y = jnp.maximum(y * scale2[None, :, None, None] + shift2[None, :, None, None], 0.0)
    return y


if __name__ == "__main__":
    key = jax.random.PRNGKey(0)
    ks = jax.random.split(key, 12)

    N, Cin, H, W = 2, 4, 16, 16
    Cout = 8
    eps = 1e-5

    x = jax.random.normal(ks[0], (N, Cin, H, W), jnp.float32)

    # conv weights (bias=False per module default), PyTorch OIHW layout
    w1 = jax.random.normal(ks[1], (Cout, Cin, 3, 3), jnp.float32) * 0.2
    w2 = jax.random.normal(ks[2], (Cout, Cout, 3, 3), jnp.float32) * 0.2

    # BatchNorm params + running stats, folded to scale/shift (eval mode)
    gamma1 = 1.0 + 0.1 * jax.random.normal(ks[3], (Cout,), jnp.float32)
    beta1 = 0.1 * jax.random.normal(ks[4], (Cout,), jnp.float32)
    mean1 = 0.1 * jax.random.normal(ks[5], (Cout,), jnp.float32)
    var1 = jnp.abs(jax.random.normal(ks[6], (Cout,), jnp.float32)) + 0.5
    gamma2 = 1.0 + 0.1 * jax.random.normal(ks[7], (Cout,), jnp.float32)
    beta2 = 0.1 * jax.random.normal(ks[8], (Cout,), jnp.float32)
    mean2 = 0.1 * jax.random.normal(ks[9], (Cout,), jnp.float32)
    var2 = jnp.abs(jax.random.normal(ks[10], (Cout,), jnp.float32)) + 0.5

    scale1 = gamma1 / jnp.sqrt(var1 + eps)
    shift1 = beta1 - mean1 * scale1
    scale2 = gamma2 / jnp.sqrt(var2 + eps)
    shift2 = beta2 - mean2 * scale2

    ref = jax.block_until_ready(
        _ref_forward(x, w1, w2, scale1, shift1, scale2, shift2))

    # f32-operand MXU path (v5e default / tight numerics): exact-ish check.
    out_f32 = jax.block_until_ready(
        bottleneck2conv(x, w1, w2, scale1, shift1, scale2, shift2,
                        compute_dtype=jnp.float32))
    assert out_f32.shape == (N, Cout, H, W), out_f32.shape
    err = float(jnp.max(jnp.abs(out_f32 - ref)))
    assert err < 1e-3, f"f32 path max abs err {err}"

    # Default bf16-operand path (v6e/v7x): fp32 accumulation, loose check
    # (expected accuracy envelope of bf16 operand rounding at K=9*C).
    out_bf16 = jax.block_until_ready(
        bottleneck2conv(x, w1, w2, scale1, shift1, scale2, shift2))
    err_bf16 = float(jnp.max(jnp.abs(out_bf16 - ref)))
    assert err_bf16 < 0.5, f"bf16 path max abs err {err_bf16}"

    print("KERNEL_OK")
</pallas_src>

<mosaic_0001>
module attributes {stable_mosaic.version = 11 : i64} {
  func.func @_bottleneck2conv_kernel(%arg0: i32, %arg1: memref<1x8x256xf32, #tpu.memory_space<vmem>>, %arg2: memref<8x72xf32, #tpu.memory_space<vmem>>, %arg3: memref<8x72xf32, #tpu.memory_space<vmem>>, %arg4: memref<8x1xf32, #tpu.memory_space<vmem>>, %arg5: memref<8x1xf32, #tpu.memory_space<vmem>>, %arg6: memref<9x1x256xf32, #tpu.memory_space<vmem>>, %arg7: memref<1x8x256xf32, #tpu.memory_space<vmem>>, %arg8: memref<72x256xf32, #tpu.memory_space<vmem>>, %arg9: memref<72x256xf32, #tpu.memory_space<vmem>>) attributes {dimension_semantics = [#tpu.dimension_semantics<parallel>], iteration_bounds = array<i64: 2>, scalar_prefetch = 0 : i64, scratch_operands = 2 : i64, tpu.core_type = #tpu.core_type<tc>, window_params = [{transform_indices = @transform_0, window_bounds = array<i64: 1, 8, 256>}, {pipeline_mode = #tpu.pipeline_mode<synchronous>, transform_indices = @transform_1, window_bounds = array<i64: 8, 72>}, {pipeline_mode = #tpu.pipeline_mode<synchronous>, transform_indices = @transform_2, window_bounds = array<i64: 8, 72>}, {pipeline_mode = #tpu.pipeline_mode<synchronous>, transform_indices = @transform_3, window_bounds = array<i64: 8, 1>}, {pipeline_mode = #tpu.pipeline_mode<synchronous>, transform_indices = @transform_4, window_bounds = array<i64: 8, 1>}, {pipeline_mode = #tpu.pipeline_mode<synchronous>, transform_indices = @transform_5, window_bounds = array<i64: 9, 1, 256>}, {transform_indices = @transform_6, window_bounds = array<i64: 1, 8, 256>}]} {
    %c0 = arith.constant 0 : index
    %c0_0 = arith.constant 0 : index
    %c0_1 = arith.constant 0 : index
    %0 = vector.load %arg1[%c0, %c0_0, %c0_1] : memref<1x8x256xf32, #tpu.memory_space<vmem>>, vector<1x8x256xf32>
    %1 = vector.shape_cast %0 : vector<1x8x256xf32> to vector<8x256xf32>
    %c17_i32 = arith.constant 17 : i32
    %2 = tpu.dynamic_rotate %1 by %c17_i32 dim 1 : vector<8x256xf32>, i32 -> vector<8x256xf32>
    %c0_2 = arith.constant 0 : index
    %c0_3 = arith.constant 0 : index
    %c0_4 = arith.constant 0 : index
    %3 = vector.load %arg6[%c0_2, %c0_3, %c0_4] : memref<9x1x256xf32, #tpu.memory_space<vmem>>, vector<1x1x256xf32>
    %4 = vector.shape_cast %3 : vector<1x1x256xf32> to vector<1x256xf32>
    %5 = vector.broadcast %4 : vector<1x256xf32> to vector<8x256xf32>
    %6 = arith.mulf %2, %5 : vector<8x256xf32>
    %c0_5 = arith.constant 0 : index
    %c0_6 = arith.constant 0 : index
    %7 = vector.load %arg8[%c0_5, %c0_6] : memref<72x256xf32, #tpu.memory_space<vmem>>, vector<8x256xf32>
    tpu.vector_store %arg8[%c0_5, %c0_6], %6 {strides = array<i32>} : memref<72x256xf32, #tpu.memory_space<vmem>>, vector<8x256xf32>,
    %c16_i32 = arith.constant 16 : i32
    %8 = tpu.dynamic_rotate %1 by %c16_i32 dim 1 : vector<8x256xf32>, i32 -> vector<8x256xf32>
    %c1 = arith.constant 1 : index
    %c0_7 = arith.constant 0 : index
    %c0_8 = arith.constant 0 : index
    %9 = vector.load %arg6[%c1, %c0_7, %c0_8] : memref<9x1x256xf32, #tpu.memory_space<vmem>>, vector<1x1x256xf32>
    %10 = vector.shape_cast %9 : vector<1x1x256xf32> to vector<1x256xf32>
    %11 = vector.broadcast %10 : vector<1x256xf32> to vector<8x256xf32>
    %12 = arith.mulf %8, %11 : vector<8x256xf32>
    %c8 = arith.constant 8 : index
    %c0_9 = arith.constant 0 : index
    %13 = vector.load %arg8[%c8, %c0_9] : memref<72x256xf32, #tpu.memory_space<vmem>>, vector<8x256xf32>
    tpu.vector_store %arg8[%c8, %c0_9], %12 {strides = array<i32>} : memref<72x256xf32, #tpu.memory_space<vmem>>, vector<8x256xf32>,
    %c15_i32 = arith.constant 15 : i32
    %14 = tpu.dynamic_rotate %1 by %c15_i32 dim 1 : vector<8x256xf32>, i32 -> vector<8x256xf32>
    %c2 = arith.constant 2 : index
    %c0_10 = arith.constant 0 : index
    %c0_11 = arith.constant 0 : index
    %15 = vector.load %arg6[%c2, %c0_10, %c0_11] : memref<9x1x256xf32, #tpu.memory_space<vmem>>, vector<1x1x256xf32>
    %16 = vector.shape_cast %15 : vector<1x1x256xf32> to vector<1x256xf32>
    %17 = vector.broadcast %16 : vector<1x256xf32> to vector<8x256xf32>
    %18 = arith.mulf %14, %17 : vector<8x256xf32>
    %c16 = arith.constant 16 : index
    %c0_12 = arith.constant 0 : index
    %19 = vector.load %arg8[%c16, %c0_12] : memref<72x256xf32, #tpu.memory_space<vmem>>, vector<8x256xf32>
    tpu.vector_store %arg8[%c16, %c0_12], %18 {strides = array<i32>} : memref<72x256xf32, #tpu.memory_space<vmem>>, vector<8x256xf32>,
    %c1_i32 = arith.constant 1 : i32
    %20 = tpu.dynamic_rotate %1 by %c1_i32 dim 1 : vector<8x256xf32>, i32 -> vector<8x256xf32>
    %c3 = arith.constant 3 : index
    %c0_13 = arith.constant 0 : index
    %c0_14 = arith.constant 0 : index
    %21 = vector.load %arg6[%c3, %c0_13, %c0_14] : memref<9x1x256xf32, #tpu.memory_space<vmem>>, vector<1x1x256xf32>
    %22 = vector.shape_cast %21 : vector<1x1x256xf32> to vector<1x256xf32>
    %23 = vector.broadcast %22 : vector<1x256xf32> to vector<8x256xf32>
    %24 = arith.mulf %20, %23 : vector<8x256xf32>
    %c24 = arith.constant 24 : index
    %c0_15 = arith.constant 0 : index
    %25 = vector.load %arg8[%c24, %c0_15] : memref<72x256xf32, #tpu.memory_space<vmem>>, vector<8x256xf32>
    tpu.vector_store %arg8[%c24, %c0_15], %24 {strides = array<i32>} : memref<72x256xf32, #tpu.memory_space<vmem>>, vector<8x256xf32>,
    %c32 = arith.constant 32 : index
    %c0_16 = arith.constant 0 : index
    %26 = vector.load %arg8[%c32, %c0_16] : memref<72x256xf32, #tpu.memory_space<vmem>>, vector<8x256xf32>
    tpu.vector_store %arg8[%c32, %c0_16], %1 {strides = array<i32>} : memref<72x256xf32, #tpu.memory_space<vmem>>, vector<8x256xf32>,
    %c255_i32 = arith.constant 255 : i32
    %27 = tpu.dynamic_rotate %1 by %c255_i32 dim 1 : vector<8x256xf32>, i32 -> vector<8x256xf32>
    %c5 = arith.constant 5 : index
    %c0_17 = arith.constant 0 : index
    %c0_18 = arith.constant 0 : index
    %28 = vector.load %arg6[%c5, %c0_17, %c0_18] : memref<9x1x256xf32, #tpu.memory_space<vmem>>, vector<1x1x256xf32>
    %29 = vector.shape_cast %28 : vector<1x1x256xf32> to vector<1x256xf32>
    %30 = vector.broadcast %29 : vector<1x256xf32> to vector<8x256xf32>
    %31 = arith.mulf %27, %30 : vector<8x256xf32>
    %c40 = arith.constant 40 : index
    %c0_19 = arith.constant 0 : index
    %32 = vector.load %arg8[%c40, %c0_19] : memref<72x256xf32, #tpu.memory_space<vmem>>, vector<8x256xf32>
    tpu.vector_store %arg8[%c40, %c0_19], %31 {strides = array<i32>} : memref<72x256xf32, #tpu.memory_space<vmem>>, vector<8x256xf32>,
    %c241_i32 = arith.constant 241 : i32
    %33 = tpu.dynamic_rotate %1 by %c241_i32 dim 1 : vector<8x256xf32>, i32 -> vector<8x256xf32>
    %c6 = arith.constant 6 : index
    %c0_20 = arith.constant 0 : index
    %c0_21 = arith.constant 0 : index
    %34 = vector.load %arg6[%c6, %c0_20, %c0_21] : memref<9x1x256xf32, #tpu.memory_space<vmem>>, vector<1x1x256xf32>
    %35 = vector.shape_cast %34 : vector<1x1x256xf32> to vector<1x256xf32>
    %36 = vector.broadcast %35 : vector<1x256xf32> to vector<8x256xf32>
    %37 = arith.mulf %33, %36 : vector<8x256xf32>
    %c48 = arith.constant 48 : index
    %c0_22 = arith.constant 0 : index
    %38 = vector.load %arg8[%c48, %c0_22] : memref<72x256xf32, #tpu.memory_space<vmem>>, vector<8x256xf32>
    tpu.vector_store %arg8[%c48, %c0_22], %37 {strides = array<i32>} : memref<72x256xf32, #tpu.memory_space<vmem>>, vector<8x256xf32>,
    %c240_i32 = arith.constant 240 : i32
    %39 = tpu.dynamic_rotate %1 by %c240_i32 dim 1 : vector<8x256xf32>, i32 -> vector<8x256xf32>
    %c7 = arith.constant 7 : index
    %c0_23 = arith.constant 0 : index
    %c0_24 = arith.constant 0 : index
    %40 = vector.load %arg6[%c7, %c0_23, %c0_24] : memref<9x1x256xf32, #tpu.memory_space<vmem>>, vector<1x1x256xf32>
    %41 = vector.shape_cast %40 : vector<1x1x256xf32> to vector<1x256xf32>
    %42 = vector.broadcast %41 : vector<1x256xf32> to vector<8x256xf32>
    %43 = arith.mulf %39, %42 : vector<8x256xf32>
    %c56 = arith.constant 56 : index
    %c0_25 = arith.constant 0 : index
    %44 = vector.load %arg8[%c56, %c0_25] : memref<72x256xf32, #tpu.memory_space<vmem>>, vector<8x256xf32>
    tpu.vector_store %arg8[%c56, %c0_25], %43 {strides = array<i32>} : memref<72x256xf32, #tpu.memory_space<vmem>>, vector<8x256xf32>,
    %c239_i32 = arith.constant 239 : i32
    %45 = tpu.dynamic_rotate %1 by %c239_i32 dim 1 : vector<8x256xf32>, i32 -> vector<8x256xf32>
    %c8_26 = arith.constant 8 : index
    %c0_27 = arith.constant 0 : index
    %c0_28 = arith.constant 0 : index
    %46 = vector.load %arg6[%c8_26, %c0_27, %c0_28] : memref<9x1x256xf32, #tpu.memory_space<vmem>>, vector<1x1x256xf32>
    %47 = vector.shape_cast %46 : vector<1x1x256xf32> to vector<1x256xf32>
    %48 = vector.broadcast %47 : vector<1x256xf32> to vector<8x256xf32>
    %49 = arith.mulf %45, %48 : vector<8x256xf32>
    %c64 = arith.constant 64 : index
    %c0_29 = arith.constant 0 : index
    %50 = vector.load %arg8[%c64, %c0_29] : memref<72x256xf32, #tpu.memory_space<vmem>>, vector<8x256xf32>
    tpu.vector_store %arg8[%c64, %c0_29], %49 {strides = array<i32>} : memref<72x256xf32, #tpu.memory_space<vmem>>, vector<8x256xf32>,
    %c0_30 = arith.constant 0 : index
    %c0_31 = arith.constant 0 : index
    %51 = vector.load %arg2[%c0_30, %c0_31] : memref<8x72xf32, #tpu.memory_space<vmem>>, vector<8x72xf32>
    %c0_32 = arith.constant 0 : index
    %c0_33 = arith.constant 0 : index
    %52 = vector.load %arg8[%c0_32, %c0_33] : memref<72x256xf32, #tpu.memory_space<vmem>>, vector<72x256xf32>
    %cst = arith.constant dense<0.000000e+00> : vector<8x256xf32>
    %53 = tpu.matmul %51, %52, %cst {dimension_numbers = #tpu.dot_dimension_numbers<[1], [0], [0], [1], [0, 0, 1, 1], [], []>} : vector<8x72xf32>, vector<72x256xf32>, vector<8x256xf32> -> vector<8x256xf32>
    %c0_34 = arith.constant 0 : index
    %c0_35 = arith.constant 0 : index
    %54 = vector.load %arg4[%c0_34, %c0_35] : memref<8x1xf32, #tpu.memory_space<vmem>>, vector<8x1xf32>
    %55 = vector.broadcast %54 : vector<8x1xf32> to vector<8x256xf32>
    %56 = arith.addf %53, %55 : vector<8x256xf32>
    %cst_36 = arith.constant 0.000000e+00 : f32
    %57 = vector.broadcast %cst_36 : f32 to vector<8x256xf32>
    %58 = arith.maximumf %56, %57 : vector<8x256xf32>
    %c17_i32_37 = arith.constant 17 : i32
    %59 = tpu.dynamic_rotate %58 by %c17_i32_37 dim 1 : vector<8x256xf32>, i32 -> vector<8x256xf32>
    %c0_38 = arith.constant 0 : index
    %c0_39 = arith.constant 0 : index
    %c0_40 = arith.constant 0 : index
    %60 = vector.load %arg6[%c0_38, %c0_39, %c0_40] : memref<9x1x256xf32, #tpu.memory_space<vmem>>, vector<1x1x256xf32>
    %61 = vector.shape_cast %60 : vector<1x1x256xf32> to vector<1x256xf32>
    %62 = vector.broadcast %61 : vector<1x256xf32> to vector<8x256xf32>
    %63 = arith.mulf %59, %62 : vector<8x256xf32>
    %c0_41 = arith.constant 0 : index
    %c0_42 = arith.constant 0 : index
    %64 = vector.load %arg9[%c0_41, %c0_42] : memref<72x256xf32, #tpu.memory_space<vmem>>, vector<8x256xf32>
    tpu.vector_store %arg9[%c0_41, %c0_42], %63 {strides = array<i32>} : memref<72x256xf32, #tpu.memory_space<vmem>>, vector<8x256xf32>,
    %c16_i32_43 = arith.constant 16 : i32
    %65 = tpu.dynamic_rotate %58 by %c16_i32_43 dim 1 : vector<8x256xf32>, i32 -> vector<8x256xf32>
    %c1_44 = arith.constant 1 : index
    %c0_45 = arith.constant 0 : index
    %c0_46 = arith.constant 0 : index
    %66 = vector.load %arg6[%c1_44, %c0_45, %c0_46] : memref<9x1x256xf32, #tpu.memory_space<vmem>>, vector<1x1x256xf32>
    %67 = vector.shape_cast %66 : vector<1x1x256xf32> to vector<1x256xf32>
    %68 = vector.broadcast %67 : vector<1x256xf32> to vector<8x256xf32>
    %69 = arith.mulf %65, %68 : vector<8x256xf32>
    %c8_47 = arith.constant 8 : index
    %c0_48 = arith.constant 0 : index
    %70 = vector.load %arg9[%c8_47, %c0_48] : memref<72x256xf32, #tpu.memory_space<vmem>>, vector<8x256xf32>
    tpu.vector_store %arg9[%c8_47, %c0_48], %69 {strides = array<i32>} : memref<72x256xf32, #tpu.memory_space<vmem>>, vector<8x256xf32>,
    %c15_i32_49 = arith.constant 15 : i32
    %71 = tpu.dynamic_rotate %58 by %c15_i32_49 dim 1 : vector<8x256xf32>, i32 -> vector<8x256xf32>
    %c2_50 = arith.constant 2 : index
    %c0_51 = arith.constant 0 : index
    %c0_52 = arith.constant 0 : index
    %72 = vector.load %arg6[%c2_50, %c0_51, %c0_52] : memref<9x1x256xf32, #tpu.memory_space<vmem>>, vector<1x1x256xf32>
    %73 = vector.shape_cast %72 : vector<1x1x256xf32> to vector<1x256xf32>
    %74 = vector.broadcast %73 : vector<1x256xf32> to vector<8x256xf32>
    %75 = arith.mulf %71, %74 : vector<8x256xf32>
    %c16_53 = arith.constant 16 : index
    %c0_54 = arith.constant 0 : index
    %76 = vector.load %arg9[%c16_53, %c0_54] : memref<72x256xf32, #tpu.memory_space<vmem>>, vector<8x256xf32>
    tpu.vector_store %arg9[%c16_53, %c0_54], %75 {strides = array<i32>} : memref<72x256xf32, #tpu.memory_space<vmem>>, vector<8x256xf32>,
    %c1_i32_55 = arith.constant 1 : i32
    %77 = tpu.dynamic_rotate %58 by %c1_i32_55 dim 1 : vector<8x256xf32>, i32 -> vector<8x256xf32>
    %c3_56 = arith.constant 3 : index
    %c0_57 = arith.constant 0 : index
    %c0_58 = arith.constant 0 : index
    %78 = vector.load %arg6[%c3_56, %c0_57, %c0_58] : memref<9x1x256xf32, #tpu.memory_space<vmem>>, vector<1x1x256xf32>
    %79 = vector.shape_cast %78 : vector<1x1x256xf32> to vector<1x256xf32>
    %80 = vector.broadcast %79 : vector<1x256xf32> to vector<8x256xf32>
    %81 = arith.mulf %77, %80 : vector<8x256xf32>
    %c24_59 = arith.constant 24 : index
    %c0_60 = arith.constant 0 : index
    %82 = vector.load %arg9[%c24_59, %c0_60] : memref<72x256xf32, #tpu.memory_space<vmem>>, vector<8x256xf32>
    tpu.vector_store %arg9[%c24_59, %c0_60], %81 {strides = array<i32>} : memref<72x256xf32, #tpu.memory_space<vmem>>, vector<8x256xf32>,
    %c32_61 = arith.constant 32 : index
    %c0_62 = arith.constant 0 : index
    %83 = vector.load %arg9[%c32_61, %c0_62] : memref<72x256xf32, #tpu.memory_space<vmem>>, vector<8x256xf32>
    tpu.vector_store %arg9[%c32_61, %c0_62], %58 {strides = array<i32>} : memref<72x256xf32, #tpu.memory_space<vmem>>, vector<8x256xf32>,
    %c255_i32_63 = arith.constant 255 : i32
    %84 = tpu.dynamic_rotate %58 by %c255_i32_63 dim 1 : vector<8x256xf32>, i32 -> vector<8x256xf32>
    %c5_64 = arith.constant 5 : index
    %c0_65 = arith.constant 0 : index
    %c0_66 = arith.constant 0 : index
    %85 = vector.load %arg6[%c5_64, %c0_65, %c0_66] : memref<9x1x256xf32, #tpu.memory_space<vmem>>, vector<1x1x256xf32>
    %86 = vector.shape_cast %85 : vector<1x1x256xf32> to vector<1x256xf32>
    %87 = vector.broadcast %86 : vector<1x256xf32> to vector<8x256xf32>
    %88 = arith.mulf %84, %87 : vector<8x256xf32>
    %c40_67 = arith.constant 40 : index
    %c0_68 = arith.constant 0 : index
    %89 = vector.load %arg9[%c40_67, %c0_68] : memref<72x256xf32, #tpu.memory_space<vmem>>, vector<8x256xf32>
    tpu.vector_store %arg9[%c40_67, %c0_68], %88 {strides = array<i32>} : memref<72x256xf32, #tpu.memory_space<vmem>>, vector<8x256xf32>,
    %c241_i32_69 = arith.constant 241 : i32
    %90 = tpu.dynamic_rotate %58 by %c241_i32_69 dim 1 : vector<8x256xf32>, i32 -> vector<8x256xf32>
    %c6_70 = arith.constant 6 : index
    %c0_71 = arith.constant 0 : index
    %c0_72 = arith.constant 0 : index
    %91 = vector.load %arg6[%c6_70, %c0_71, %c0_72] : memref<9x1x256xf32, #tpu.memory_space<vmem>>, vector<1x1x256xf32>
    %92 = vector.shape_cast %91 : vector<1x1x256xf32> to vector<1x256xf32>
    %93 = vector.broadcast %92 : vector<1x256xf32> to vector<8x256xf32>
    %94 = arith.mulf %90, %93 : vector<8x256xf32>
    %c48_73 = arith.constant 48 : index
    %c0_74 = arith.constant 0 : index
    %95 = vector.load %arg9[%c48_73, %c0_74] : memref<72x256xf32, #tpu.memory_space<vmem>>, vector<8x256xf32>
    tpu.vector_store %arg9[%c48_73, %c0_74], %94 {strides = array<i32>} : memref<72x256xf32, #tpu.memory_space<vmem>>, vector<8x256xf32>,
    %c240_i32_75 = arith.constant 240 : i32
    %96 = tpu.dynamic_rotate %58 by %c240_i32_75 dim 1 : vector<8x256xf32>, i32 -> vector<8x256xf32>
    %c7_76 = arith.constant 7 : index
    %c0_77 = arith.constant 0 : index
    %c0_78 = arith.constant 0 : index
    %97 = vector.load %arg6[%c7_76, %c0_77, %c0_78] : memref<9x1x256xf32, #tpu.memory_space<vmem>>, vector<1x1x256xf32>
    %98 = vector.shape_cast %97 : vector<1x1x256xf32> to vector<1x256xf32>
    %99 = vector.broadcast %98 : vector<1x256xf32> to vector<8x256xf32>
    %100 = arith.mulf %96, %99 : vector<8x256xf32>
    %c56_79 = arith.constant 56 : index
    %c0_80 = arith.constant 0 : index
    %101 = vector.load %arg9[%c56_79, %c0_80] : memref<72x256xf32, #tpu.memory_space<vmem>>, vector<8x256xf32>
    tpu.vector_store %arg9[%c56_79, %c0_80], %100 {strides = array<i32>} : memref<72x256xf32, #tpu.memory_space<vmem>>, vector<8x256xf32>,
    %c239_i32_81 = arith.constant 239 : i32
    %102 = tpu.dynamic_rotate %58 by %c239_i32_81 dim 1 : vector<8x256xf32>, i32 -> vector<8x256xf32>
    %c8_82 = arith.constant 8 : index
    %c0_83 = arith.constant 0 : index
    %c0_84 = arith.constant 0 : index
    %103 = vector.load %arg6[%c8_82, %c0_83, %c0_84] : memref<9x1x256xf32, #tpu.memory_space<vmem>>, vector<1x1x256xf32>
    %104 = vector.shape_cast %103 : vector<1x1x256xf32> to vector<1x256xf32>
    %105 = vector.broadcast %104 : vector<1x256xf32> to vector<8x256xf32>
    %106 = arith.mulf %102, %105 : vector<8x256xf32>
    %c64_85 = arith.constant 64 : index
    %c0_86 = arith.constant 0 : index
    %107 = vector.load %arg9[%c64_85, %c0_86] : memref<72x256xf32, #tpu.memory_space<vmem>>, vector<8x256xf32>
    tpu.vector_store %arg9[%c64_85, %c0_86], %106 {strides = array<i32>} : memref<72x256xf32, #tpu.memory_space<vmem>>, vector<8x256xf32>,
    %c0_87 = arith.constant 0 : index
    %c0_88 = arith.constant 0 : index
    %108 = vector.load %arg3[%c0_87, %c0_88] : memref<8x72xf32, #tpu.memory_space<vmem>>, vector<8x72xf32>
    %c0_89 = arith.constant 0 : index
    %c0_90 = arith.constant 0 : index
    %109 = vector.load %arg9[%c0_89, %c0_90] : memref<72x256xf32, #tpu.memory_space<vmem>>, vector<72x256xf32>
    %cst_91 = arith.constant dense<0.000000e+00> : vector<8x256xf32>
    %110 = tpu.matmul %108, %109, %cst_91 {dimension_numbers = #tpu.dot_dimension_numbers<[1], [0], [0], [1], [0, 0, 1, 1], [], []>} : vector<8x72xf32>, vector<72x256xf32>, vector<8x256xf32> -> vector<8x256xf32>
    %c0_92 = arith.constant 0 : index
    %c0_93 = arith.constant 0 : index
    %111 = vector.load %arg5[%c0_92, %c0_93] : memref<8x1xf32, #tpu.memory_space<vmem>>, vector<8x1xf32>
    %112 = vector.broadcast %111 : vector<8x1xf32> to vector<8x256xf32>
    %113 = arith.addf %110, %112 : vector<8x256xf32>
    %cst_94 = arith.constant 0.000000e+00 : f32
    %114 = vector.broadcast %cst_94 : f32 to vector<8x256xf32>
    %115 = arith.maximumf %113, %114 : vector<8x256xf32>
    %c0_95 = arith.constant 0 : index
    %c0_96 = arith.constant 0 : index
    %c0_97 = arith.constant 0 : index
    %116 = vector.load %arg7[%c0_95, %c0_96, %c0_97] : memref<1x8x256xf32, #tpu.memory_space<vmem>>, vector<1x8x256xf32>
    %117 = vector.shape_cast %116 : vector<1x8x256xf32> to vector<8x256xf32>
    %118 = vector.shape_cast %115 : vector<8x256xf32> to vector<1x8x256xf32>
    tpu.vector_store %arg7[%c0_95, %c0_96, %c0_97], %118 {strides = array<i32>} : memref<1x8x256xf32, #tpu.memory_space<vmem>>, vector<1x8x256xf32>,
    return
  }
  func.func @transform_0(%arg0: i32) -> (i32, i32, i32) {
    %c0_i32 = arith.constant 0 : i32
    %c0_i32_0 = arith.constant 0 : i32
    %c0_i32_1 = arith.constant 0 : i32
    return %arg0, %c0_i32, %c0_i32_0 : i32, i32, i32
  }
  func.func @transform_1(%arg0: i32) -> (i32, i32) {
    %c0_i32 = arith.constant 0 : i32
    %c0_i32_0 = arith.constant 0 : i32
    %c0_i32_1 = arith.constant 0 : i32
    return %c0_i32, %c0_i32_0 : i32, i32
  }
  func.func @transform_2(%arg0: i32) -> (i32, i32) {
    %c0_i32 = arith.constant 0 : i32
    %c0_i32_0 = arith.constant 0 : i32
    %c0_i32_1 = arith.constant 0 : i32
    return %c0_i32, %c0_i32_0 : i32, i32
  }
  func.func @transform_3(%arg0: i32) -> (i32, i32) {
    %c0_i32 = arith.constant 0 : i32
    %c0_i32_0 = arith.constant 0 : i32
    %c0_i32_1 = arith.constant 0 : i32
    return %c0_i32, %c0_i32_0 : i32, i32
  }
  func.func @transform_4(%arg0: i32) -> (i32, i32) {
    %c0_i32 = arith.constant 0 : i32
    %c0_i32_0 = arith.constant 0 : i32
    %c0_i32_1 = arith.constant 0 : i32
    return %c0_i32, %c0_i32_0 : i32, i32
  }
  func.func @transform_5(%arg0: i32) -> (i32, i32, i32) {
    %c0_i32 = arith.constant 0 : i32
    %c0_i32_0 = arith.constant 0 : i32
    %c0_i32_1 = arith.constant 0 : i32
    %c0_i32_2 = arith.constant 0 : i32
    return %c0_i32, %c0_i32_0, %c0_i32_1 : i32, i32, i32
  }
  func.func @transform_6(%arg0: i32) -> (i32, i32, i32) {
    %c0_i32 = arith.constant 0 : i32
    %c0_i32_0 = arith.constant 0 : i32
    %c0_i32_1 = arith.constant 0 : i32
    return %arg0, %c0_i32, %c0_i32_0 : i32, i32, i32
  }
}

</mosaic_0001>

<bundles_post_ra>
// kernel: tpu_custom_call.1
= control target key start
LH: loop header
LB: loop body
LE: loop exit
PB: predicated region body
PF: predicated region fallthrough
CT: control target
= control target key end

     0   :  { %11 = vsyncpa [#allocation5], 0  ;;  %s1612_s0 = inlined_call_operand.hbm [shape: f32[2,8,256], index: 0, kind: input, shape index: {}]   ;;  %s1613_s1 = inlined_call_operand.vmem [shape: f32[8,72], index: 1, kind: input, shape index: {}]   ;;  %s1614_s2 = inlined_call_operand.vmem [shape: f32[8,72], index: 2, kind: input, shape index: {}]   ;;  %s1615_s3 = inlined_call_operand.vmem [shape: f32[8,1], index: 3, kind: input, shape index: {}]   ;;  %s1616_s4 = inlined_call_operand.vmem [shape: f32[8,1], index: 4, kind: input, shape index: {}]   ;;  %s1617_s5 = inlined_call_operand.vmem [shape: f32[9,1,256], index: 5, kind: input, shape index: {}]   ;;  %s1618_s6 = inlined_call_operand.hbm [shape: f32[2,8,256], index: 6, kind: output, shape index: {}]  }
   0x1   :  { %13 = vsyncpa [#allocation5 + $0x1], 0 }
   0x2   :  { %14 = vsyncpa [#allocation6], 0 }
   0x3   :  { %16 = vsyncpa [#allocation6 + $0x1], 0  ;;  %s1199_s21 = smov 0   ;;  %s1201_s22 = smov 0  }
   0x4   :  { %s1203_s23 = smov 0   ;;  %s1205_s24 = smov 0  }
   0x5 LB: > { %s1220_s25 = sadd.s32 4294967295, %s1150_s24   ;;  %s933_s26 = sadd.s32 4294967294, %s1150_s24   ;;  %s1150_s24 = sphi %s1205_s24, %s1635_s24   ;;  %s1146_s23 = sphi %s1203_s23, %s1634_s23   ;;  %s1142_s22 = sphi %s1201_s22, %s1633_s22   ;;  %s1138_s21 = sphi %s1199_s21, %s1632_s21  }
   0x6   : > { %s1224_s27 = sadd.s32 1, %s1150_s24   ;;  %s29_s28 = sadd.s32 1, %s1146_s23 }
   0x7   : > { %s26_s29 = ssub.s32 %s1150_s24, %s1224_s27  ;;  %p36_p0 = scmp.ne.s32.totalorder %s1146_s23, %s1142_s22 }
   0x8   : > { %p27_p1 = scmp.eq.s32.totalorder %s26_s29, 0  ;;  %p37_p2 = scmp.eq.s32.totalorder %s1150_s24, 0 }
   0x9   : > { %p42_p3 = scmp.ne.s32.totalorder %s1142_s22, %s1138_s21  ;;  %p43_p4 = scmp.eq.s32.totalorder %s1220_s25, 0 }
   0xa   : > { %s1236_s30 = scalar_select %p27_p1, %s1146_s23, %s29_s28  }
   0xb   : > { %p1238_p5 = por %p37_p2, %p36_p0  ;;  %p1242_p6 = por %p43_p4, %p42_p3 }
   0xc   : > { %p171_p7 = scmp.eq.s32.totalorder %s1220_s25, 1  ;;  %p177_p8 = scmp.eq.s32.totalorder %s933_s26, 1 }
   0xd   : > { %p1009_p10 = scmp.lt.s32.totalorder %s1150_s24, 2  ;;  %s212_s11 = sand.u32 1, %s1146_s23  }
   0xe   : > { %p1249_p11 = por %p171_p7, %p36_p0  ;;  %p1253_p12 = por %p177_p8, %p42_p3 }
   0xf   : > { %s963_s12 = sshll.u32 %s1150_s24, 8  ;;  %s936_s13 = sshll.u32 %s212_s11, 4 }
  0x10   : > { %s1623_s9 = scalar_select %p1249_p11, 1, 0 }
  0x11   : > { %s1624_s10 = scalar_select %p1253_p12, 1, 0 }
  0x12   : > { %s1262_s16 = scalar_lea.hbm %s1612_s0, %s963_s12  ;;  %s216_s17 = scalar_lea.vmem [#allocation4], %s936_s13 }
  0x13   : > { %s224_s18 = sshll.u32 %s216_s17, 4  ;;  %p1266_p13 = pnand %p1009_p10, %p1238_p5  ;;  %s1270_s18 = int_to_ptr.vmem [resolvable:$true] %s224_s18 }
  0x14   : > { %s213_s20 = scalar_lea.sflag [#allocation5], %s212_s11  ;;  %s1054_s26 = scalar_lea.hbm %s1262_s16, 256 }
  0x15   : > { %p1055_p2 = scmp.ne.s32.totalorder %s1262_s16, %s1054_s26  ;;  %p1056_p3 = pneg %p1266_p13 }
  0x16   : > { %s1059_s7 = scalar_lea.hbm %s1612_s0, 512  ;;  %p1060_p5 = scmp.lt.u32.totalorder %s1262_s16, %s1612_s0 }
  0x17   : > { %p1057_p4 = pnand %p1056_p3, %p1055_p2  ;;  %p1061_p8 = scmp.lt.u32.totalorder %s1059_s7, %s1054_s26 }
  0x18   : > { %p1063_p9 = scmp.lt.u32.totalorder %s1054_s26, %s1262_s16 }
  0x19   : > { %p1058_p7 = pneg %p1057_p4  ;;  %p1062_p10 = por %p1061_p8, %p1060_p5 }
  0x1b   : > { %p1064_p0 = por %p1063_p9, %p1062_p10 }
  0x1d   : > { %p1065_p1 = pnand %p1064_p0, %p1058_p7 }
  0x1f   : > { %1068 = shalt.err (!%p1065_p1)
}
  0x20   : > { %s1069_s11 = scalar_lea.vmem %s1270_s18, 256  ;;  %s1152_s14 = smov [#allocation4]  }
  0x21   : > { %p1070_p2 = scmp.ne.s32.totalorder %s1270_s18, %s1069_s11  ;;  %s1074_s15 = sshll.u32 %s1152_s14, 4  ;;  %s1075_s15 = int_to_ptr.vmem [resolvable:$false] %s1074_s15 }
  0x22   : > { %s1076_s17 = scalar_lea.vmem %s1075_s15, 512  ;;  %p1077_p11 = scmp.lt.s32.totalorder %s1270_s18, %s1075_s15 }
  0x23   : > { %p1072_p4 = pnand %p1070_p2, %p1056_p3  ;;  %p1078_p5 = scmp.lt.s32.totalorder %s1076_s17, %s1069_s11 }
  0x25   : > { %p1073_p12 = pneg %p1072_p4  ;;  %p1079_p8 = por %p1078_p5, %p1077_p11 }
  0x27   : > { %p1080_p9 = pnand %p1079_p8, %p1073_p12 }
  0x29   : > { %1083 = shalt.err (!%p1080_p9)
}
  0x2a   : > { %1004 = dma.hbm_to_vmem [thread:$0]  (!%p1266_p13), %s1262_s16, 256, %s1270_s18, %s213_s20  }
  0x2b   : > { %p1626_p0 = scmp.lt.s32.totalorder %s1150_s24, 3  ;;  %p1627_p1 = scmp.ge.s32.totalorder %s1150_s24, 1 }
  0x2d   : > { %p230_p3 = pnand %p1627_p1, %p1626_p0 }
  0x2e   : > { %s1304_s26 = sand.u32 (!%p230_p3), 1, %s1142_s22  }
  0x2f   : > { %233 = sbr.rel (%p230_p3) target bundleno = 807 (0x327), region = 44  ;;  %s1620_s28 = sshll.u32 (!%p230_p3), %s1304_s26, 4 }
  0x30   : > { %s236_s29 = scalar_lea.sflag (!%p230_p3), [#allocation5], %s1304_s26  ;;  %s239_s19 = scalar_lea.vmem (!%p230_p3), [#allocation4], %s1620_s28 }
  0x36   : > { %1129 = dma.done.wait (%p1242_p6), %s236_s29, 256  }
  0x37   : > { %1131 = vsyncadd (%p1242_p6), %s236_s29, 4294967040  ;;  %v1314_v0 = vld [vmem:[%s239_s19] sm:$0xff]  ;;  %s1153_s16 = smov 16   ;;  %s1154_s18 = smov 17   ;;  %v1320_v1 = vld [vmem:[%s239_s19 + $0x8] sm:$0xff]  ;;  %v1159_v2 = vmov 0.0   ;;  %v274_v5 = vlaneseq }
  0x38   : > { %295 = vrot.lane.b32.xlu1 %v1314_v0, %s1153_s16  ;;  %270 = vrot.lane.b32.xlu0 %v1314_v0, %s1154_s18  ;;  %s1155_s8 = smov 15   ;;  %s1156_s20 = smov 1   ;;  %v1160_v3 = vmov 0   ;;  %v484_v4 = vld [vmem:[%s1615_s3] sm:$0xff]  ;;  %v945_v38 = vld [vmem:[%s1617_s5 + $0xa] sm:$0x3] }
  0x39   : > { %s1157_s7 = smov 127   ;;  %s1158_s12 = smov 113   ;;  %558 = vmatprep.mubr.f32.mxu0 %v1159_v2  ;;  %837 = vmatprep.mubr.f32.mxu1 %v1159_v2  ;;  %v282_v6 = vshrl.u32 %v274_v5, 7  ;;  %v1353_v7 = vand.u32 127, %v274_v5  ;;  %v942_v10 = vld [vmem:[%s1617_s5 + $0x2] sm:$0x3] }
  0x3a   : > { %1053 = vset.pattern.permute.xlu0 %v1160_v3  ;;  %s1161_s13 = smov 112   ;;  %s1162_s11 = smov 111   ;;  %v279_v11 = vld [vmem:[%s1617_s5] sm:$0x3]  ;;  %v943_v28 = vld [vmem:[%s1617_s5 + $0x4] sm:$0x3] }
  0x3b   : > { %v1355_v8 = vsub.s32 0, %v282_v6  ;;  %v1357_v9 = vsub.s32 1, %v282_v6  ;;  %vm299_vm0 = vcmp.lt.s32.totalorder %v1353_v7, 16  ;;  %vm276_vm1 = vcmp.lt.s32.totalorder %v1353_v7, 17  ;;  %v944_v29 = vld [vmem:[%s1617_s5 + $0x6] sm:$0x3] }
  0x3c   : > { %297 = vrot.lane.b32.xlu1 %v1320_v1, %s1153_s16  ;;  %272 = vrot.lane.b32.xlu0 %v1320_v1, %s1154_s18  ;;  %vm323_vm2 = vcmp.lt.s32.totalorder %v1353_v7, 15  ;;  %vm347_vm3 = vcmp.lt.s32.totalorder %v1353_v7, 1  ;;  %vm373_vm4 = vcmp.lt.s32.totalorder %v1353_v7, 127  ;;  %v946_v59 = vld [vmem:[%s1617_s5 + $0xc] sm:$0x3]  ;;  %vm397_vm5 = vcmp.lt.s32.totalorder %v1353_v7, 113 }
  0x3d   : > { %v308_v14 = vrot.slane %v942_v10, %v1355_v8  ;;  %v284_v15 = vrot.slane %v279_v11, %v1355_v8  ;;  %v288_v16 = vrot.slane %v279_v11, %v1357_v9  ;;  %v312_v17 = vrot.slane %v942_v10, %v1357_v9  ;;  %v947_v60 = vld [vmem:[%s1617_s5 + $0xe] sm:$0x3]  ;;  %v948_v10 = vld [vmem:[%s1617_s5 + $0x10] sm:$0x3]  ;;  %s849_s14 = scalar_lea.sflag [#allocation6], %s1304_s26  ;;  %p1629_p11 = scmp.ne.s32.totalorder %s1623_s9, 0 }
  0x3e   : > { %v332_v34 = vrot.slane %v943_v28, %v1355_v8  ;;  %v336_v35 = vrot.slane %v943_v28, %v1357_v9  ;;  %v356_v36 = vrot.slane %v944_v29, %v1355_v8  ;;  %v360_v37 = vrot.slane %v944_v29, %v1357_v9  ;;  %v465_v29 = vld [vmem:[%s1613_s1] sm:$0xff] }
  0x3f   : > { %v382_v45 = vrot.slane %v945_v38, %v1355_v8  ;;  %v386_v46 = vrot.slane %v945_v38, %v1357_v9  ;;  %v406_v3 = vrot.slane %v946_v59, %v1355_v8  ;;  %vm421_vm6 = vcmp.lt.s32.totalorder %v1353_v7, 112 }
  0x40   : > { %321 = vrot.lane.b32.xlu1 %v1320_v1, %s1155_s8  ;;  %319 = vrot.lane.b32.xlu0 %v1314_v0, %s1155_s8  ;;  %v430_v5 = vrot.slane %v947_v60, %v1355_v8  ;;  %v434_v6 = vrot.slane %v947_v60, %v1357_v9  ;;  %vm445_vm7 = vcmp.lt.s32.totalorder %v1353_v7, 111  ;;  %vm490_vm8 = vcmask 588800  }
  0x44   : > { %345 = vrot.lane.b32.xlu1 %v1320_v1, %s1156_s20  ;;  %343 = vrot.lane.b32.xlu0 %v1314_v0, %s1156_s20 }
  0x48   : > { %371 = vrot.lane.b32.xlu1 %v1320_v1, %s1157_s7  ;;  %369 = vrot.lane.b32.xlu0 %v1314_v0, %s1157_s7 }
  0x4c   : > { %395 = vrot.lane.b32.xlu1 %v1320_v1, %s1158_s12  ;;  %393 = vrot.lane.b32.xlu0 %v1314_v0, %s1158_s12 }
  0x50   : > { %419 = vrot.lane.b32.xlu1 %v1320_v1, %s1161_s13  ;;  %417 = vrot.lane.b32.xlu0 %v1314_v0, %s1161_s13 }
  0x54   : > { %443 = vrot.lane.b32.xlu1 %v1320_v1, %s1162_s11  ;;  %441 = vrot.lane.b32.xlu0 %v1314_v0, %s1162_s11 }
  0x58   : > { %487 = vperm.xlu0 %1053, %v484_v4   ;;  %v410_v4 = vrot.slane %v946_v59, %v1357_v9  ;;  %v952_v59 = vld [vmem:[%s1617_s5 + $0x6] sm:$0x3] }
  0xaa   : > { %v296_v12 = vpop.permute.xlu1 %295  ;;  %v271_v13 = vpop.permute.xlu0 %270 }
  0xae   : > { %v298_v18 = vpop.permute.xlu1 %297  ;;  %v273_v19 = vpop.permute.xlu0 %272 }
  0xaf   : > { %v300_v20 = vsel %vm299_vm0, %v296_v12, %v298_v18  ;;  %v301_v21 = vsel %vm299_vm0, %v298_v18, %v296_v12  ;;  %v277_v22 = vsel %vm276_vm1, %v271_v13, %v273_v19  ;;  %v278_v23 = vsel %vm276_vm1, %v273_v19, %v271_v13 }
  0xb0   : > { %v315_v24 = vmul.f32 %v308_v14, %v301_v21  ;;  %v291_v25 = vmul.f32 %v284_v15, %v278_v23  ;;  %v292_v26 = vmul.f32 %v288_v16, %v277_v22  ;;  %v316_v27 = vmul.f32 %v312_v17, %v300_v20 }
  0xb1   : > { %v458_v15 = vrot.slane %v948_v10, %v1357_v9  ;;  %v454_v20 = vrot.slane %v948_v10, %v1355_v8 }
  0xb2   : > { %v322_v30 = vpop.permute.xlu1 %321  ;;  %v320_v31 = vpop.permute.xlu0 %319  ;;  %v965_v32 = vpack.c.bf16 %v316_v27, %v292_v26  ;;  %v967_v33 = vpack.c.bf16 %v315_v24, %v291_v25 }
  0xb3   : > { %v324_v39 = vsel %vm323_vm2, %v320_v31, %v322_v30  ;;  %v325_v40 = vsel %vm323_vm2, %v322_v30, %v320_v31 }
  0xb4   : > { %966 = vmatprep.subr.bf16.mxu0 %v965_v32  ;;  %v339_v47 = vmul.f32 %v332_v34, %v325_v40  ;;  %v340_v48 = vmul.f32 %v336_v35, %v324_v39  ;;  %v573_v40 = vld [vmem:[%s1617_s5] sm:$0x3] }
  0xb5   : > { %968 = vmatpush1.bf16.msra.mxu0 %v967_v33 }
  0xb6   : > { %v346_v41 = vpop.permute.xlu1 %345  ;;  %v344_v42 = vpop.permute.xlu0 %343 }
  0xb7   : > { %v348_v43 = vsel %vm347_vm3, %v344_v42, %v346_v41  ;;  %v349_v44 = vsel %vm347_vm3, %v346_v41, %v344_v42  ;;  %v950_v41 = vld [vmem:[%s1617_s5 + $0x2] sm:$0x3] }
  0xb8   : > { %v363_v49 = vmul.f32 %v356_v36, %v349_v44  ;;  %v364_v50 = vmul.f32 %v360_v37, %v348_v43  ;;  %v764_v37 = vld [vmem:[%s1616_s4] sm:$0xff]  ;;  %v578_v44 = vrot.slane %v573_v40, %v1355_v8 }
  0xba   : > { %v372_v51 = vpop.permute.xlu1 %371  ;;  %v370_v52 = vpop.permute.xlu0 %369  ;;  %v969_v53 = vpack.c.bf16 %v364_v50, %v340_v48  ;;  %v971_v54 = vpack.c.bf16 %v363_v49, %v339_v47  ;;  %v604_v47 = vrot.slane %v950_v41, %v1357_v9 }
  0xbb   : > { %v374_v55 = vsel %vm373_vm4, %v370_v52, %v372_v51  ;;  %v375_v56 = vsel %vm373_vm4, %v372_v51, %v370_v52 }
  0xbc   : > { %v389_v57 = vmul.f32 %v382_v45, %v374_v55  ;;  %v390_v58 = vmul.f32 %v386_v46, %v375_v56  ;;  %970 = vmatprep.subr.bf16.mxu0 %v969_v53  ;;  %v600_v45 = vrot.slane %v950_v41, %v1355_v8  ;;  %v582_v46 = vrot.slane %v573_v40, %v1357_v9 }
  0xbd   : > { %972 = vmatpush1.bf16.msra.mxu0 %v971_v54 }
  0xbe   : > { %v396_v61 = vpop.permute.xlu1 %395  ;;  %v394_v62 = vpop.permute.xlu0 %393  ;;  %v973_v63 = vpack.c.bf16 %v390_v58, %v1320_v1  ;;  %v975_v2 = vpack.c.bf16 %v389_v57, %v1314_v0  ;;  %v951_v58 = vld [vmem:[%s1617_s5 + $0x4] sm:$0x3] }
  0xbf   : > { %v398_v1 = vsel %vm397_vm5, %v394_v62, %v396_v61  ;;  %v399_v0 = vsel %vm397_vm5, %v396_v61, %v394_v62 }
  0xc0   : > { %974 = vmatprep.subr.bf16.mxu0 %v973_v63  ;;  %v413_v16 = vmul.f32 %v406_v3, %v398_v1  ;;  %v414_v17 = vmul.f32 %v410_v4, %v399_v0  ;;  %v626_v3 = vrot.slane %v951_v58, %v1357_v9  ;;  %v644_v4 = vrot.slane %v952_v59, %v1355_v8 }
  0xc1   : > { %976 = vmatpush1.bf16.msra.mxu0 %v975_v2  ;;  %v622_v2 = vrot.slane %v951_v58, %v1355_v8 }
  0xc2   : > { %v420_v11 = vpop.permute.xlu1 %419  ;;  %v418_v12 = vpop.permute.xlu0 %417 }
  0xc3   : > { %v422_v13 = vsel %vm421_vm6, %v418_v12, %v420_v11  ;;  %v423_v14 = vsel %vm421_vm6, %v420_v11, %v418_v12 }
  0xc4   : > { %v437_v18 = vmul.f32 %v430_v5, %v422_v13  ;;  %v438_v19 = vmul.f32 %v434_v6, %v423_v14  ;;  %v648_v5 = vrot.slane %v952_v59, %v1357_v9  ;;  %v953_v6 = vld [vmem:[%s1617_s5 + $0xa] sm:$0x3] }
  0xc5   : > { %v668_v13 = vrot.slane %v953_v6, %v1355_v8  ;;  %v672_v14 = vrot.slane %v953_v6, %v1357_v9 }
  0xc6   : > { %v444_v21 = vpop.permute.xlu1 %443  ;;  %v977_v22 = vpack.c.bf16 %v438_v19, %v414_v17  ;;  %v442_v23 = vpop.permute.xlu0 %441  ;;  %v979_v24 = vpack.c.bf16 %v437_v18, %v413_v16 }
  0xc7   : > { %v446_v25 = vsel %vm445_vm7, %v442_v23, %v444_v21  ;;  %v447_v26 = vsel %vm445_vm7, %v444_v21, %v442_v23 }
  0xc8   : > { %978 = vmatprep.subr.bf16.mxu0 %v977_v22  ;;  %v462_v27 = vmul.f32 %v458_v15, %v447_v26  ;;  %v461_v28 = vmul.f32 %v454_v20, %v446_v25 }
  0xc9   : > { %980 = vmatpush1.bf16.msra.mxu0 %v979_v24 }
  0xca   : > { %510 = vmatprep.subr.mxu0 %v462_v27  ;;  %v954_v27 = vld [vmem:[%s1617_s5 + $0xc] sm:$0x3] }
  0xcd   : > { %511 = vmatpush1.msra.mxu0 %v461_v28  ;;  %v955_v28 = vld [vmem:[%s1617_s5 + $0xe] sm:$0x3] }
  0xce   : > { %949 = vmatmul.mubr.msk.f32.vlgmr.msra.gmra.mrb[0].mxu0 %vm490_vm8, %v465_v29 }
  0xd7   : > { %v488_v30 = vpop.permute.xlu0 %487 }
 0x1a1   : > { %v560_v31 = vpop.f32.mrb[0].mxu0 }
 0x1a2   : > { %v561_v32 = vadd.f32 %v560_v31, %v488_v30  ;;  %v562_v33 = vpop.f32.mrb[1].mxu0 }
 0x1a3   : > { %v563_v35 = vadd.f32 %v562_v33, %v488_v30  ;;  %v690_v33 = vrot.slane %v954_v27, %v1355_v8 }
 0x1a4   : > { %v1445_v34 = vmax.f32 %v561_v32, 0.0 }
 0x1a5   : > { %v1451_v36 = vmax.f32 %v563_v35, 0.0  ;;  %v694_v35 = vrot.slane %v954_v27, %v1357_v9 }
 0x1a6   : > { %589 = vrot.lane.b32.xlu0 %v1445_v34, %s1153_s16  ;;  %567 = vrot.lane.b32.xlu1 %v1445_v34, %s1154_s18 }
 0x1aa   : > { %611 = vrot.lane.b32.xlu0 %v1445_v34, %s1155_s8  ;;  %569 = vrot.lane.b32.xlu1 %v1451_v36, %s1154_s18 }
 0x1ae   : > { %633 = vrot.lane.b32.xlu0 %v1445_v34, %s1156_s20  ;;  %591 = vrot.lane.b32.xlu1 %v1451_v36, %s1153_s16  ;;  %s1163_s16 = smov [#allocation7]  }
 0x1af   : > { %s1088_s18 = sshll.u32 %s1163_s16, 4  ;;  %s1089_s18 = int_to_ptr.vmem [resolvable:$false] %s1088_s18 }
 0x1b2   : > { %657 = vrot.lane.b32.xlu0 %v1445_v34, %s1157_s7  ;;  %613 = vrot.lane.b32.xlu1 %v1451_v36, %s1155_s8  ;;  %s1090_s8 = scalar_lea.vmem %s1089_s18, 512 }
 0x1b6   : > { %679 = vrot.lane.b32.xlu0 %v1445_v34, %s1158_s12  ;;  %635 = vrot.lane.b32.xlu1 %v1451_v36, %s1156_s20 }
 0x1ba   : > { %701 = vrot.lane.b32.xlu0 %v1445_v34, %s1161_s13  ;;  %659 = vrot.lane.b32.xlu1 %v1451_v36, %s1157_s7 }
 0x1be   : > { %723 = vrot.lane.b32.xlu0 %v1445_v34, %s1162_s11  ;;  %681 = vrot.lane.b32.xlu1 %v1451_v36, %s1158_s12  ;;  %s964_s12 = sshll.u32 %s1220_s25, 8 }
 0x1bf   : > { %s1568_s28 = scalar_lea.hbm %s1618_s6, %s964_s12 }
 0x1c2   : > { %767 = vperm.xlu0 %1053, %v764_v37   ;;  %703 = vrot.lane.b32.xlu1 %v1451_v36, %s1161_s13  ;;  %v712_v37 = vrot.slane %v955_v28, %v1355_v8  ;;  %s1628_s13 = sshll.u32 %s1304_s26, 4 }
 0x1c6   : > { %725 = vrot.lane.b32.xlu1 %v1451_v36, %s1162_s11  ;;  %s267_s11 = scalar_lea.vmem [#allocation7], %s1628_s13 }
 0x1c7   : > { %s863_s17 = sshll.u32 %s267_s11, 4  ;;  %s1570_s17 = int_to_ptr.vmem [resolvable:$true] %s863_s17 }
 0x1c8   : > { %s1084_s25 = scalar_lea.vmem %s1570_s17, 256  ;;  %p1091_p7 = scmp.lt.s32.totalorder %s1570_s17, %s1089_s18 }
 0x1c9   : > { %p1085_p6 = scmp.ne.s32.totalorder %s1570_s17, %s1084_s25  ;;  %p1092_p10 = scmp.lt.s32.totalorder %s1090_s8, %s1084_s25 }
 0x1cb   : > { %p1086_p12 = pnand %p1085_p6, %p1629_p11  ;;  %p1093_p2 = por %p1092_p10, %p1091_p7 }
 0x1cd   : > { %p1087_p13 = pneg %p1086_p12 }
 0x1cf   : > { %p1094_p4 = pnand %p1093_p2, %p1087_p13 }
 0x218   : > { %v590_v38 = vpop.permute.xlu0 %589  ;;  %v568_v39 = vpop.permute.xlu1 %567 }
 0x21c   : > { %v612_v42 = vpop.permute.xlu0 %611  ;;  %v570_v43 = vpop.permute.xlu1 %569 }
 0x21d   : > { %v571_v48 = vsel %vm276_vm1, %v568_v39, %v570_v43  ;;  %v572_v49 = vsel %vm276_vm1, %v570_v43, %v568_v39  ;;  %v956_v39 = vld [vmem:[%s1617_s5 + $0x10] sm:$0x3] }
 0x21e   : > { %v585_v54 = vmul.f32 %v578_v44, %v572_v49  ;;  %v586_v56 = vmul.f32 %v582_v46, %v571_v48  ;;  %v738_v43 = vrot.slane %v956_v39, %v1357_v9 }
 0x220   : > { %v634_v50 = vpop.permute.xlu0 %633  ;;  %v592_v51 = vpop.permute.xlu1 %591 }
 0x221   : > { %v593_v52 = vsel %vm299_vm0, %v590_v38, %v592_v51  ;;  %v594_v53 = vsel %vm299_vm0, %v592_v51, %v590_v38  ;;  %v716_v38 = vrot.slane %v955_v28, %v1357_v9 }
 0x222   : > { %v607_v55 = vmul.f32 %v600_v45, %v594_v53  ;;  %v608_v57 = vmul.f32 %v604_v47, %v593_v52  ;;  %v734_v52 = vrot.slane %v956_v39, %v1355_v8 }
 0x224   : > { %v614_v60 = vpop.permute.xlu1 %613  ;;  %v981_v61 = vpack.c.bf16 %v608_v57, %v586_v56  ;;  %v983_v62 = vpack.c.bf16 %v607_v55, %v585_v54  ;;  %v658_v63 = vpop.permute.xlu0 %657  ;;  %v745_v56 = vld [vmem:[%s1614_s2] sm:$0xff] }
 0x225   : > { %v615_v10 = vsel %vm323_vm2, %v612_v42, %v614_v60  ;;  %v616_v1 = vsel %vm323_vm2, %v614_v60, %v612_v42 }
 0x226   : > { %982 = vmatprep.subr.bf16.mxu1 %v981_v61  ;;  %v629_v15 = vmul.f32 %v622_v2, %v616_v1  ;;  %v630_v16 = vmul.f32 %v626_v3, %v615_v10 }
 0x227   : > { %984 = vmatpush1.bf16.msra.mxu1 %v983_v62 }
 0x228   : > { %v636_v0 = vpop.permute.xlu1 %635  ;;  %v680_v19 = vpop.permute.xlu0 %679 }
 0x229   : > { %v637_v11 = vsel %vm347_vm3, %v634_v50, %v636_v0  ;;  %v638_v12 = vsel %vm347_vm3, %v636_v0, %v634_v50 }
 0x22a   : > { %v651_v17 = vmul.f32 %v644_v4, %v638_v12  ;;  %v652_v18 = vmul.f32 %v648_v5, %v637_v11 }
 0x22c   : > { %v660_v20 = vpop.permute.xlu1 %659  ;;  %v985_v21 = vpack.c.bf16 %v652_v18, %v630_v16  ;;  %v987_v22 = vpack.c.bf16 %v651_v17, %v629_v15  ;;  %v702_v32 = vpop.permute.xlu0 %701 }
 0x22d   : > { %v661_v23 = vsel %vm373_vm4, %v658_v63, %v660_v20  ;;  %v662_v24 = vsel %vm373_vm4, %v660_v20, %v658_v63 }
 0x22e   : > { %v675_v25 = vmul.f32 %v668_v13, %v661_v23  ;;  %v676_v26 = vmul.f32 %v672_v14, %v662_v24  ;;  %986 = vmatprep.subr.bf16.mxu1 %v985_v21 }
 0x22f   : > { %988 = vmatpush1.bf16.msra.mxu1 %v987_v22 }
 0x230   : > { %v682_v29 = vpop.permute.xlu1 %681  ;;  %v989_v30 = vpack.c.bf16 %v676_v26, %v1451_v36  ;;  %v991_v31 = vpack.c.bf16 %v675_v25, %v1445_v34  ;;  %v724_v48 = vpop.permute.xlu0 %723 }
 0x231   : > { %v683_v40 = vsel %vm397_vm5, %v680_v19, %v682_v29  ;;  %v684_v34 = vsel %vm397_vm5, %v682_v29, %v680_v19 }
 0x232   : > { %990 = vmatprep.subr.bf16.mxu1 %v989_v30  ;;  %v697_v44 = vmul.f32 %v690_v33, %v683_v40  ;;  %v698_v45 = vmul.f32 %v694_v35, %v684_v34 }
 0x233   : > { %992 = vmatpush1.bf16.msra.mxu1 %v991_v31 }
 0x234   : > { %v704_v36 = vpop.permute.xlu1 %703 }
 0x235   : > { %v705_v41 = vsel %vm421_vm6, %v702_v32, %v704_v36  ;;  %v706_v42 = vsel %vm421_vm6, %v704_v36, %v702_v32 }
 0x236   : > { %v719_v46 = vmul.f32 %v712_v37, %v705_v41  ;;  %v720_v47 = vmul.f32 %v716_v38, %v706_v42 }
 0x238   : > { %v726_v49 = vpop.permute.xlu1 %725  ;;  %v993_v50 = vpack.c.bf16 %v720_v47, %v698_v45  ;;  %v995_v51 = vpack.c.bf16 %v719_v46, %v697_v44 }
 0x239   : > { %v728_v53 = vsel %vm445_vm7, %v726_v49, %v724_v48  ;;  %v727_v54 = vsel %vm445_vm7, %v724_v48, %v726_v49 }
 0x23a   : > { %v742_v55 = vmul.f32 %v738_v43, %v728_v53  ;;  %994 = vmatprep.subr.bf16.mxu1 %v993_v50  ;;  %v741_v9 = vmul.f32 %v734_v52, %v727_v54 }
 0x23b   : > { %996 = vmatpush1.bf16.msra.mxu1 %v995_v51 }
 0x23c   : > { %789 = vmatprep.subr.mxu1 %v742_v55 }
 0x23f   : > { %790 = vmatpush1.msra.mxu1 %v741_v9 }
 0x240   : > { %957 = vmatmul.mubr.msk.f32.vlgmr.msra.gmra.mrb[0].mxu1 %vm490_vm8, %v745_v56 }
 0x241   : > { %v768_v8 = vpop.permute.xlu0 %767 }
 0x313   : > { %v839_v57 = vpop.f32.mrb[0].mxu1 }
 0x314   : > { %v840_v58 = vadd.f32 %v839_v57, %v768_v8  ;;  %v841_v59 = vpop.f32.mrb[1].mxu1 }
 0x315   : > { %v842_v7 = vadd.f32 %v841_v59, %v768_v8 }
 0x316   : > { %v844_v60 = vmax.f32 %v840_v58, 0.0 }
 0x317   : > { %v845_v61 = vmax.f32 %v842_v7, 0.0 }
 0x318   : > { %846 = vst [vmem:[%s267_s11] sm:$0xff] %v844_v60 }
 0x319   : > { %847 = vst [vmem:[%s267_s11 + $0x8] sm:$0xff] %v845_v61 }
 0x31a   : > { %1097 = shalt.err (!%p1094_p4)
}
 0x31b   : > { %s1098_s26 = scalar_lea.hbm %s1568_s28, 256  ;;  %s1102_s15 = scalar_lea.hbm %s1618_s6, 512 }
 0x31c   : > { %p1099_p5 = scmp.ne.s32.totalorder %s1568_s28, %s1098_s26  ;;  %p1103_p0 = scmp.lt.u32.totalorder %s1568_s28, %s1618_s6 }
 0x31d   : > { %p1104_p1 = scmp.lt.u32.totalorder %s1102_s15, %s1098_s26  ;;  %p1106_p6 = scmp.lt.u32.totalorder %s1098_s26, %s1568_s28 }
 0x31e   : > { %p1100_p8 = pnand %p1099_p5, %p1629_p11 }
 0x31f   : > { %p1105_p3 = por %p1104_p1, %p1103_p0 }
 0x320   : > { %p1101_p9 = pneg %p1100_p8 }
 0x321   : > { %p1107_p12 = por %p1106_p6, %p1105_p3 }
 0x323   : > { %p1108_p13 = pnand %p1107_p12, %p1101_p9 }
 0x325   : > { %1111 = shalt.err (!%p1108_p13)
}
 0x326   : > { %999 = dma.vmem_to_hbm [thread:$0]  (%p1629_p11), %s1570_s17, 256, %s1568_s28, %s849_s14  }
 0x327 PF: > { %s875_s11 = sand.u32 1, %s1138_s21   ;;  %p1630_p7 = scmp.ne.s32.totalorder %s1624_s10, 0 }
 0x328   : > { %p1631_p10 = scmp.ge.s32.totalorder %s1150_s24, 2  ;;  %s876_s29 = scalar_lea.sflag [#allocation6], %s875_s11 }
 0x32a   : > { %p1006_p2 = pnand %p1631_p10, %p1630_p7 }
 0x32c   : > { %1133 = dma.done.wait (!%p1006_p2), %s876_s29, 256  }
 0x32d   : > { %1135 = vsyncadd (!%p1006_p2), %s876_s29, 4294967040  ;;  %p19_p4 = scmp.ge.s32.totalorder %s1224_s27, 4   ;;  %s1632_s21 = smov %s1142_s22 }
 0x32e   : > { %s1633_s22 = smov %s1146_s23  ;;  %s1634_s23 = smov %s1236_s30 }
 0x32f   : > { %s1635_s24 = smov %s1224_s27  ;;  %21 = sbr.rel (!%p19_p4) target bundleno = 5 (0x5), region = 96 }
 0x336   :  { %881 = vsyncpa [#allocation5], 1 }
 0x337   :  { %883 = vsyncpa [#allocation5 + $0x1], 1 }
 0x338   :  { %884 = vsyncpa [#allocation6], 1 }
 0x339   :  { %886 = vsyncpa [#allocation6 + $0x1], 1 }

</bundles_post_ra>
